<compile_context>
chip_gen: v7x
topology: tpu7x:2x2x1
jax: 0.10.0
libtpu: 0.0.40
codegen_flags: <defaults>
</compile_context>

<pallas_src>
import jax
import jax.numpy as jnp
from jax import lax
from jax.experimental import pallas as pl
from jax.experimental.pallas import tpu as pltpu


def supcon_kernel(cls_ref, wt_ref, bt_ref, wb_ref, bb_ref, out_ref):
    # cls_ref is a contiguous (TILE_B, E) bf16 tile of <CLS> activations.
    x = cls_ref[...].astype(jnp.float32)                      # f32 for norm math

    # Dropout: nn.Dropout is identity at inference (model.eval()).

    # F.normalize(x, dim=1) == x / max(||x||_2, 1e-12)
    #                       == x * rsqrt(max(||x||^2, 1e-24))   (EUP rsqrt)
    sq_norm = jnp.sum(x * x, axis=-1, keepdims=True)          # (TILE_B, 1) f32
    inv_norm = lax.rsqrt(jnp.maximum(sq_norm, 1e-24))
    x_n = (x * inv_norm).astype(jnp.bfloat16)

    # Classifier: top (Linear E->H) -> ReLU -> bottom (Linear H->T_pad).
    # bf16 operands into the MXU, f32 accumulation; bias/ReLU stay f32 (VPU).
    h = jnp.dot(x_n, wt_ref[...], preferred_element_type=jnp.float32)  # (TILE_B, H)
    h = jnp.maximum(h + bt_ref[...], 0.0)

    logit = jnp.dot(h.astype(jnp.bfloat16), wb_ref[...],
                    preferred_element_type=jnp.float32)       # (TILE_B, T_pad)
    out_ref[...] = (logit + bb_ref[...]).astype(out_ref.dtype)


def _round_up(x, m):
    return ((x + m - 1) // m) * m


def _pick_tile_b(B, max_tile_b, align=256):
    """Batch tile: big (amortize per-step overhead), 256-aligned for the MXU,
    and capped at ceil(B/2) so large batches always give >= 2 grid blocks
    (v7x megacore sharding).  Tiny batches get a single 8-aligned block."""
    if B <= align:
        return _round_up(B, 8)
    half = -(-B // 2)
    return max(8, min(max_tile_b, _round_up(half, align)))


def supcon_forward(last_hidden_state, w_top, b_top, w_bottom, b_bottom,
                   *, max_tile_b=1024):
    """SupCon head forward.

    last_hidden_state: [B, S, E] (encoder output).  Weights are stored as
    [in, out] (transpose of nn.Linear's [out, in]); biases are [1, out].
    Returns [B, T] f32 logits.
    """
    B, S, E = last_hidden_state.shape
    H = w_top.shape[1]
    T = w_bottom.shape[1]

    # ---- one-time parameter prep (done once offline in production) --------
    # bf16 weights: halves HBM->VMEM DMA bytes; native MXU dtype on v6e/v7x.
    wt = w_top.astype(jnp.bfloat16)
    # Lane-dense head: pad output dim up to a multiple of 128 so the output
    # store is unmasked and the second matmul's N dim is a full MXU block.
    T_pad = max(128, _round_up(T, 128))
    wb = jnp.zeros((H, T_pad), jnp.bfloat16).at[:, :T].set(
        w_bottom.astype(jnp.bfloat16))
    bt = b_top.astype(jnp.float32)
    bb = jnp.zeros((1, T_pad), jnp.float32).at[:, :T].set(
        b_bottom.astype(jnp.float32))

    # ---- CLS slab prep: slice (contiguous), cast to bf16, pad only 2-D -----
    # Never pad / copy the full [B, S, E] tensor — only the (B, E) CLS slab.
    cls = last_hidden_state[:, 0, :].astype(jnp.bfloat16)     # (B, E) bf16
    tile_b = _pick_tile_b(B, max_tile_b)
    n_blocks = pl.cdiv(B, tile_b)
    B_pad = n_blocks * tile_b
    if B_pad != B:
        cls = jnp.pad(cls, ((0, B_pad - B), (0, 0)))          # tiny 2-D pad

    # ---- explicit VMEM budget (keeps big tiles safe on v5e/v7x limits) -----
    vmem_bytes = (
        2 * tile_b * E * 2            # double-buffered bf16 CLS tiles
        + 2 * tile_b * T_pad * 4      # double-buffered f32 output tiles
        + (E * H * 2 + H * 4 + H * T_pad * 2 + T_pad * 4)  # resident weights
    )
    vmem_limit = int(min(max(2 * vmem_bytes, 4 << 20), 64 << 20))

    out = pl.pallas_call(
        supcon_kernel,
        out_shape=jax.ShapeDtypeStruct((B_pad, T_pad), jnp.float32),
        grid_spec=pltpu.PrefetchScalarGridSpec(
            num_scalar_prefetch=0,
            grid=(n_blocks,),
            in_specs=[
                # Contiguous CLS slab tile: (tile_b, E).
                pl.BlockSpec((tile_b, E), lambda i: (i, 0)),
                # Weights/biases: constant block -> VMEM-resident, single-buffered.
                pl.BlockSpec((E, H), lambda i: (0, 0),
                             pipeline_mode=pl.Buffered(1)),
                pl.BlockSpec((1, H), lambda i: (0, 0),
                             pipeline_mode=pl.Buffered(1)),
                pl.BlockSpec((H, T_pad), lambda i: (0, 0),
                             pipeline_mode=pl.Buffered(1)),
                pl.BlockSpec((1, T_pad), lambda i: (0, 0),
                             pipeline_mode=pl.Buffered(1)),
            ],
            out_specs=pl.BlockSpec((tile_b, T_pad), lambda i: (i, 0)),
        ),
        compiler_params=pltpu.CompilerParams(
            # Batch blocks are independent -> shardable across TCs (v7x megacore).
            dimension_semantics=("parallel",),
            vmem_limit_bytes=vmem_limit),
    )(cls, wt, bt, wb, bb)

    return out[:B, :T]


def reference_forward_f32(last_hidden_state, w_top, b_top, w_bottom, b_bottom):
    """Pure-f32 reference (PyTorch-faithful semantics)."""
    x = last_hidden_state[:, 0, :]
    x = x / jnp.maximum(jnp.linalg.norm(x, axis=1, keepdims=True), 1e-12)
    h = jnp.maximum(x @ w_top + b_top, 0.0)
    return h @ w_bottom + b_bottom


def reference_forward_bf16(last_hidden_state, w_top, b_top, w_bottom, b_bottom):
    """Reference matching the kernel's dtype flow (bf16 CLS + MXU operands,
    f32 norm / accumulation / bias)."""
    x = last_hidden_state[:, 0, :].astype(jnp.bfloat16).astype(jnp.float32)
    x = x * lax.rsqrt(jnp.maximum(jnp.sum(x * x, axis=1, keepdims=True), 1e-24))
    h = jnp.dot(x.astype(jnp.bfloat16), w_top.astype(jnp.bfloat16),
                preferred_element_type=jnp.float32) + b_top
    h = jnp.maximum(h, 0.0)
    return jnp.dot(h.astype(jnp.bfloat16), w_bottom.astype(jnp.bfloat16),
                   preferred_element_type=jnp.float32) + b_bottom


if __name__ == "__main__":
    # Small shapes implied by the module: batch, seq, embed_dim, hidden_dim, target_size
    B, S, E, H, T = 8, 16, 128, 128, 16

    key = jax.random.PRNGKey(0)
    k_hid, k_wt, k_bt, k_wb, k_bb = jax.random.split(key, 5)

    # Synthetic encoder output (stands in for BertModel last_hidden_state).
    last_hidden_state = jax.random.normal(k_hid, (B, S, E), dtype=jnp.float32)

    # Classifier params (deterministic init). Stored as [in, out] = PyTorch W.T.
    w_top = jax.random.normal(k_wt, (E, H), dtype=jnp.float32) * (1.0 / jnp.sqrt(E))
    b_top = jax.random.normal(k_bt, (1, H), dtype=jnp.float32) * 0.02
    w_bottom = jax.random.normal(k_wb, (H, T), dtype=jnp.float32) * (1.0 / jnp.sqrt(H))
    b_bottom = jax.random.normal(k_bb, (1, T), dtype=jnp.float32) * 0.02

    out = supcon_forward(last_hidden_state, w_top, b_top, w_bottom, b_bottom)
    out = jax.block_until_ready(out)
    assert out.shape == (B, T)

    # Tight check against a reference with the same bf16 dtype flow.
    ref_matched = reference_forward_bf16(
        last_hidden_state, w_top, b_top, w_bottom, b_bottom)
    assert jnp.allclose(out, ref_matched, atol=2e-3, rtol=2e-3), \
        "mismatch vs dtype-matched reference"

    # Looser sanity check against the pure-f32 (PyTorch-semantics) reference.
    ref_f32 = reference_forward_f32(
        last_hidden_state, w_top, b_top, w_bottom, b_bottom)
    assert jnp.allclose(out, ref_f32, atol=5e-2, rtol=5e-2), \
        "mismatch vs f32 reference"

    print("KERNEL_OK")
</pallas_src>

<mosaic_0001>
module attributes {stable_mosaic.version = 11 : i64} {
  func.func @supcon_kernel(%arg0: i32, %arg1: memref<8x128xbf16, #tpu.memory_space<vmem>>, %arg2: memref<128x128xbf16, #tpu.memory_space<vmem>>, %arg3: memref<1x128xf32, #tpu.memory_space<vmem>>, %arg4: memref<128x128xbf16, #tpu.memory_space<vmem>>, %arg5: memref<1x128xf32, #tpu.memory_space<vmem>>, %arg6: memref<8x128xf32, #tpu.memory_space<vmem>>) attributes {dimension_semantics = [#tpu.dimension_semantics<parallel>], iteration_bounds = array<i64: 1>, scalar_prefetch = 0 : i64, scratch_operands = 0 : i64, tpu.core_type = #tpu.core_type<tc>, window_params = [{transform_indices = @transform_0, window_bounds = array<i64: 8, 128>}, {pipeline_mode = #tpu.pipeline_mode<synchronous>, transform_indices = @transform_1, window_bounds = array<i64: 128, 128>}, {pipeline_mode = #tpu.pipeline_mode<synchronous>, transform_indices = @transform_2, window_bounds = array<i64: 1, 128>}, {pipeline_mode = #tpu.pipeline_mode<synchronous>, transform_indices = @transform_3, window_bounds = array<i64: 128, 128>}, {pipeline_mode = #tpu.pipeline_mode<synchronous>, transform_indices = @transform_4, window_bounds = array<i64: 1, 128>}, {transform_indices = @transform_5, window_bounds = array<i64: 8, 128>}]} {
    %c0 = arith.constant 0 : index
    %c0_0 = arith.constant 0 : index
    %0 = vector.load %arg1[%c0, %c0_0] : memref<8x128xbf16, #tpu.memory_space<vmem>>, vector<8x128xbf16>
    %1 = arith.extf %0 : vector<8x128xbf16> to vector<8x128xf32>
    %2 = arith.mulf %1, %1 : vector<8x128xf32>
    %cst = arith.constant dense<0.000000e+00> : vector<8xf32>
    %3 = vector.multi_reduction <add>, %2, %cst [1] : vector<8x128xf32> to vector<8xf32>
    %4 = vector.shape_cast %3 : vector<8xf32> to vector<8x1xf32>
    %cst_1 = arith.constant 1.000000e-24 : f32
    %5 = vector.broadcast %cst_1 : f32 to vector<8x1xf32>
    %6 = arith.maximumf %4, %5 : vector<8x1xf32>
    %7 = math.rsqrt %6 : vector<8x1xf32>
    %8 = vector.broadcast %7 : vector<8x1xf32> to vector<8x128xf32>
    %9 = arith.mulf %1, %8 : vector<8x128xf32>
    %10 = arith.truncf %9 : vector<8x128xf32> to vector<8x128xbf16>
    %c0_2 = arith.constant 0 : index
    %c0_3 = arith.constant 0 : index
    %11 = vector.load %arg2[%c0_2, %c0_3] : memref<128x128xbf16, #tpu.memory_space<vmem>>, vector<128x128xbf16>
    %cst_4 = arith.constant dense<0.000000e+00> : vector<8x128xf32>
    %12 = tpu.matmul %10, %11, %cst_4 {dimension_numbers = #tpu.dot_dimension_numbers<[1], [0], [0], [1], [0, 0, 1, 1], [], []>} : vector<8x128xbf16>, vector<128x128xbf16>, vector<8x128xf32> -> vector<8x128xf32>
    %c0_5 = arith.constant 0 : index
    %c0_6 = arith.constant 0 : index
    %13 = vector.load %arg3[%c0_5, %c0_6] : memref<1x128xf32, #tpu.memory_space<vmem>>, vector<1x128xf32>
    %14 = vector.broadcast %13 : vector<1x128xf32> to vector<8x128xf32>
    %15 = arith.addf %12, %14 : vector<8x128xf32>
    %cst_7 = arith.constant 0.000000e+00 : f32
    %16 = vector.broadcast %cst_7 : f32 to vector<8x128xf32>
    %17 = arith.maximumf %15, %16 : vector<8x128xf32>
    %18 = arith.truncf %17 : vector<8x128xf32> to vector<8x128xbf16>
    %c0_8 = arith.constant 0 : index
    %c0_9 = arith.constant 0 : index
    %19 = vector.load %arg4[%c0_8, %c0_9] : memref<128x128xbf16, #tpu.memory_space<vmem>>, vector<128x128xbf16>
    %cst_10 = arith.constant dense<0.000000e+00> : vector<8x128xf32>
    %20 = tpu.matmul %18, %19, %cst_10 {dimension_numbers = #tpu.dot_dimension_numbers<[1], [0], [0], [1], [0, 0, 1, 1], [], []>} : vector<8x128xbf16>, vector<128x128xbf16>, vector<8x128xf32> -> vector<8x128xf32>
    %c0_11 = arith.constant 0 : index
    %c0_12 = arith.constant 0 : index
    %21 = vector.load %arg5[%c0_11, %c0_12] : memref<1x128xf32, #tpu.memory_space<vmem>>, vector<1x128xf32>
    %22 = vector.broadcast %21 : vector<1x128xf32> to vector<8x128xf32>
    %23 = arith.addf %20, %22 : vector<8x128xf32>
    %c0_13 = arith.constant 0 : index
    %c0_14 = arith.constant 0 : index
    %24 = vector.load %arg6[%c0_13, %c0_14] : memref<8x128xf32, #tpu.memory_space<vmem>>, vector<8x128xf32>
    tpu.vector_store %arg6[%c0_13, %c0_14], %23 {strides = array<i32>} : memref<8x128xf32, #tpu.memory_space<vmem>>, vector<8x128xf32>,
    return
  }
  func.func @transform_0(%arg0: i32) -> (i32, i32) {
    %c0_i32 = arith.constant 0 : i32
    %c0_i32_0 = arith.constant 0 : i32
    return %arg0, %c0_i32 : i32, i32
  }
  func.func @transform_1(%arg0: i32) -> (i32, i32) {
    %c0_i32 = arith.constant 0 : i32
    %c0_i32_0 = arith.constant 0 : i32
    %c0_i32_1 = arith.constant 0 : i32
    return %c0_i32, %c0_i32_0 : i32, i32
  }
  func.func @transform_2(%arg0: i32) -> (i32, i32) {
    %c0_i32 = arith.constant 0 : i32
    %c0_i32_0 = arith.constant 0 : i32
    %c0_i32_1 = arith.constant 0 : i32
    return %c0_i32, %c0_i32_0 : i32, i32
  }
  func.func @transform_3(%arg0: i32) -> (i32, i32) {
    %c0_i32 = arith.constant 0 : i32
    %c0_i32_0 = arith.constant 0 : i32
    %c0_i32_1 = arith.constant 0 : i32
    return %c0_i32, %c0_i32_0 : i32, i32
  }
  func.func @transform_4(%arg0: i32) -> (i32, i32) {
    %c0_i32 = arith.constant 0 : i32
    %c0_i32_0 = arith.constant 0 : i32
    %c0_i32_1 = arith.constant 0 : i32
    return %c0_i32, %c0_i32_0 : i32, i32
  }
  func.func @transform_5(%arg0: i32) -> (i32, i32) {
    %c0_i32 = arith.constant 0 : i32
    %c0_i32_0 = arith.constant 0 : i32
    return %arg0, %c0_i32 : i32, i32
  }
}

</mosaic_0001>

<bundles_post_ra>
// kernel: tpu_custom_call.1
= control target key start
LH: loop header
LB: loop body
LE: loop exit
PB: predicated region body
PF: predicated region fallthrough
CT: control target
= control target key end

     0   :  { %10 = vsyncpa [#allocation3], 0  ;;  %s605_s0 = inlined_call_operand.hbm [shape: bf16[8,128], index: 0, kind: input, shape index: {}]   ;;  %s606_s1 = inlined_call_operand.hbm [shape: bf16[128,128], index: 1, kind: input, shape index: {}]   ;;  %s607_s2 = inlined_call_operand.vmem [shape: f32[1,128], index: 2, kind: input, shape index: {}]   ;;  %s608_s3 = inlined_call_operand.hbm [shape: bf16[128,128], index: 3, kind: input, shape index: {}]   ;;  %s609_s4 = inlined_call_operand.vmem [shape: f32[1,128], index: 4, kind: input, shape index: {}]   ;;  %s610_s5 = inlined_call_operand.hbm [shape: f32[8,128], index: 5, kind: output, shape index: {}]  }
   0x1   :  { %11 = vsyncpa [#allocation6], 0 }
   0x2   :  { %12 = vsyncpa [#allocation4], 0  ;;  %s507_s18 = smov [#allocation5]   ;;  %s413_s22 = scalar_lea.hbm %s606_s1, 1024 }
   0x3   :  { %s28_s19 = sshll.u32 %s507_s18, 4  ;;  %p414_p0 = scmp.ne.s32.totalorder %s606_s1, %s413_s22  ;;  %s29_s19 = int_to_ptr.vmem [resolvable:$true] %s28_s19 }
   0x4   :  { %p417_p1 = scmp.lt.u32.totalorder %s413_s22, %s606_s1 }
   0x6   :  { %p419_p2 = pnand %p417_p1, %p414_p0 }
   0x8   :  { %422 = shalt.err (!%p419_p2)
}
   0x9   :  { %s423_s27 = scalar_lea.vmem %s29_s19, 1024  ;;  %p428_p4 = scmp.lt.s32.totalorder %s29_s19, %s29_s19 }
   0xa   :  { %p424_p3 = scmp.ne.s32.totalorder %s29_s19, %s423_s27  ;;  %p429_p5 = scmp.lt.s32.totalorder %s423_s27, %s423_s27 }
   0xc   :  { %p430_p6 = por %p429_p5, %p428_p4 }
   0xe   :  { %p431_p7 = pnand %p430_p6, %p424_p3 }
  0x10   :  { %434 = shalt.err (!%p431_p7)
}
  0x11   :  { %s508_s28 = smov 64   ;;  %s509_s29 = smov 4  }
  0x12   :  { %34 = dma.hbm_to_vmem [thread:$0]  %s606_s1, 1024, %s29_s19, [#allocation6], %s508_s28, %s508_s28, %s509_s29  }
  0x13   :  { %s510_s7 = smov [#allocation2]   ;;  %s511_s9 = smov [#allocation7]  }
  0x14   :  { %s19_s8 = sshll.u32 %s510_s7, 4  ;;  %s42_s10 = sshll.u32 %s511_s9, 4  ;;  %s20_s8 = int_to_ptr.vmem [resolvable:$true] %s19_s8  ;;  %s43_s10 = int_to_ptr.vmem [resolvable:$true] %s42_s10 }
  0x15   :  { %s435_s13 = scalar_lea.hbm %s605_s0, 64 }
  0x16   :  { %p436_p8 = scmp.ne.s32.totalorder %s605_s0, %s435_s13  ;;  %p439_p9 = scmp.lt.u32.totalorder %s435_s13, %s605_s0 }
  0x18   :  { %p441_p10 = pnand %p439_p9, %p436_p8 }
  0x1a   :  { %444 = shalt.err (!%p441_p10)
}
  0x1b   :  { %s445_s1 = scalar_lea.vmem %s20_s8, 64  ;;  %p450_p12 = scmp.lt.s32.totalorder %s20_s8, %s20_s8 }
  0x1c   :  { %p446_p11 = scmp.ne.s32.totalorder %s20_s8, %s445_s1  ;;  %p451_p13 = scmp.lt.s32.totalorder %s445_s1, %s445_s1 }
  0x1e   :  { %p452_p0 = por %p451_p13, %p450_p12 }
  0x20   :  { %p453_p1 = pnand %p452_p0, %p446_p11 }
  0x22   :  { %456 = shalt.err (!%p453_p1)
}
  0x23   :  { %22 = dma.hbm_to_vmem [thread:$0]  %s605_s0, 64, %s20_s8, [#allocation3]  }
  0x24   :  { %s457_s22 = scalar_lea.hbm %s608_s3, 1024 }
  0x25   :  { %p458_p2 = scmp.ne.s32.totalorder %s608_s3, %s457_s22  ;;  %p461_p3 = scmp.lt.u32.totalorder %s457_s22, %s608_s3 }
  0x27   :  { %p463_p4 = pnand %p461_p3, %p458_p2 }
  0x29   :  { %466 = shalt.err (!%p463_p4)
}
  0x2a   :  { %s467_s27 = scalar_lea.vmem %s43_s10, 1024  ;;  %p472_p6 = scmp.lt.s32.totalorder %s43_s10, %s43_s10 }
  0x2b   :  { %p468_p5 = scmp.ne.s32.totalorder %s43_s10, %s467_s27  ;;  %p473_p7 = scmp.lt.s32.totalorder %s467_s27, %s467_s27 }
  0x2d   :  { %p474_p8 = por %p473_p7, %p472_p6 }
  0x2f   :  { %p475_p9 = pnand %p474_p8, %p468_p5 }
  0x31   :  { %478 = shalt.err (!%p475_p9)
}
  0x32   :  { %48 = dma.hbm_to_vmem [thread:$0]  %s608_s3, 1024, %s43_s10, [#allocation6], %s508_s28, %s508_s28, %s509_s29  }
  0x33   :  { %501 = dma.done.wait [#allocation3], 64  }
  0x34   :  { %502 = vsyncadd [#allocation3], 4294967232 }
  0x35   :  { %503 = dma.done.wait [#allocation6], 2048  }
  0x36   :  { %504 = vsyncadd [#allocation6], 4294965248  ;;  %v512_v0 = vmov 0.0   ;;  %v61_v1 = vld [vmem:[#allocation2] sm:$0xf]  ;;  %v395_v3 = vld [vmem:[#allocation5] sm:$0xff]  }
  0x37   :  { %347 = vmatprep.subr.bf16.mxu0 %v512_v0  ;;  %367 = vmatprep.subr.bf16.mxu1 %v512_v0  ;;  %v62_v2 = vunpack.c.l.bf16 %v61_v1  ;;  %v396_v5 = vld [vmem:[#allocation5 + $0x8] sm:$0xff]   ;;  %v397_v6 = vld [vmem:[#allocation5 + $0x10] sm:$0xff]   ;;  %v398_v7 = vld [vmem:[#allocation5 + $0x18] sm:$0xff]   ;;  %vm513_vm0 = vmmov 0   ;;  %s514_s7 = smov [#allocation8]  }
  0x38   :  { %348 = vmatpush3.bf16.msra.mxu0 %v395_v3  ;;  %v399_v8 = vld [vmem:[#allocation5 + $0x20] sm:$0xff]   ;;  %v400_v9 = vld [vmem:[#allocation5 + $0x28] sm:$0xff]   ;;  %363 = vmatprep.mubr.msk.bf16.mxu0 %vm513_vm0, %v512_v0  ;;  %v401_v10 = vld [vmem:[#allocation5 + $0x30] sm:$0xff]   ;;  %s301_s8 = sshll.u32 %s514_s7, 4  ;;  %s302_s8 = int_to_ptr.vmem [resolvable:$true] %s301_s8 }
  0x39   :  { %v63_v4 = vmul.f32 %v62_v2, %v62_v2  ;;  %349 = vmatprep.subr.bf16.mxu0 %v512_v0  ;;  %383 = vmatprep.mubr.msk.bf16.mxu1 %vm513_vm0, %v512_v0  ;;  %v402_v11 = vld [vmem:[#allocation5 + $0x38] sm:$0xff]   ;;  %v403_v12 = vld [vmem:[#allocation7] sm:$0xff]   ;;  %v404_v13 = vld [vmem:[#allocation7 + $0x8] sm:$0xff]   ;;  %p484_p11 = scmp.lt.s32.totalorder %s302_s8, %s302_s8 }
  0x3a   :  { %368 = vmatpush3.bf16.msra.mxu1 %v403_v12  ;;  %v405_v14 = vld [vmem:[#allocation7 + $0x10] sm:$0xff]   ;;  %v406_v15 = vld [vmem:[#allocation7 + $0x18] sm:$0xff]   ;;  %v407_v16 = vld [vmem:[#allocation7 + $0x20] sm:$0xff]  }
  0x3b   :  { %64 = vadd.xlane.f32.xlu0 %v63_v4  ;;  %369 = vmatprep.subr.bf16.mxu1 %v512_v0  ;;  %v408_v17 = vld [vmem:[#allocation7 + $0x28] sm:$0xff]   ;;  %v409_v23 = vld [vmem:[#allocation7 + $0x30] sm:$0xff]   ;;  %v410_v24 = vld [vmem:[#allocation7 + $0x38] sm:$0xff]  }
  0x3c   :  { %350 = vmatpush3.bf16.msra.mxu0 %v396_v5  ;;  %v311_v25 = vld [vmem:[%s607_s2] ss:$0 sm:$0xff]  ;;  %s479_s2 = scalar_lea.vmem %s302_s8, 128 }
  0x3d   :  { %351 = vmatprep.subr.bf16.mxu0 %v512_v0  ;;  %v320_v33 = vld [vmem:[%s609_s4] ss:$0 sm:$0xff]  ;;  %p480_p10 = scmp.ne.s32.totalorder %s302_s8, %s479_s2  ;;  %p485_p12 = scmp.lt.s32.totalorder %s479_s2, %s479_s2 }
  0x3e   :  { %370 = vmatpush3.bf16.msra.mxu1 %v404_v13 }
  0x3f   :  { %371 = vmatprep.subr.bf16.mxu1 %v512_v0  ;;  %p486_p13 = por %p485_p12, %p484_p11 }
  0x40   :  { %352 = vmatpush3.bf16.msra.mxu0 %v397_v6 }
  0x41   :  { %353 = vmatprep.subr.bf16.mxu0 %v512_v0  ;;  %p487_p0 = pnand %p486_p13, %p480_p10 }
  0x42   :  { %372 = vmatpush3.bf16.msra.mxu1 %v405_v14 }
  0x43   :  { %373 = vmatprep.subr.bf16.mxu1 %v512_v0 }
  0x44   :  { %354 = vmatpush3.bf16.msra.mxu0 %v398_v7 }
  0x45   :  { %355 = vmatprep.subr.bf16.mxu0 %v512_v0 }
  0x46   :  { %374 = vmatpush3.bf16.msra.mxu1 %v406_v15 }
  0x47   :  { %375 = vmatprep.subr.bf16.mxu1 %v512_v0 }
  0x48   :  { %356 = vmatpush3.bf16.msra.mxu0 %v399_v8 }
  0x49   :  { %357 = vmatprep.subr.bf16.mxu0 %v512_v0 }
  0x4a   :  { %376 = vmatpush3.bf16.msra.mxu1 %v407_v16 }
  0x4b   :  { %377 = vmatprep.subr.bf16.mxu1 %v512_v0 }
  0x4c   :  { %358 = vmatpush3.bf16.msra.mxu0 %v400_v9 }
  0x4d   :  { %359 = vmatprep.subr.bf16.mxu0 %v512_v0 }
  0x4e   :  { %378 = vmatpush3.bf16.msra.mxu1 %v408_v17 }
  0x4f   :  { %379 = vmatprep.subr.bf16.mxu1 %v512_v0 }
  0x50   :  { %360 = vmatpush3.bf16.msra.mxu0 %v401_v10 }
  0x51   :  { %361 = vmatprep.subr.bf16.mxu0 %v512_v0 }
  0x52   :  { %380 = vmatpush3.bf16.msra.mxu1 %v409_v23 }
  0x53   :  { %381 = vmatprep.subr.bf16.mxu1 %v512_v0 }
  0x54   :  { %362 = vmatpush3.bf16.msra.mxu0 %v402_v11 }
  0x56   :  { %382 = vmatpush3.bf16.msra.mxu1 %v410_v24 }
  0xc8   :  { %v65_v18 = vpop.xlane.xlu0 %64 }
  0xc9   :  { %v66_v19 = vmax.f32 %v65_v18, 1e-24 }
  0xcb   :  { %411 = vrsqrt.f32 %v66_v19 }
  0xd5   :  { %v412_v20 = vpop.eup %411 }
  0xd6   :  { %v68_v21 = vmul.f32 %v412_v20, %v62_v2 }
  0xd8   :  { %v69_v22 = vpack.c.bf16 %v68_v21, %v68_v21 }
  0xda   :  { %364 = vmatmul.mubr.bf16.vlgmr.msra.gmra.mrb[0].mxu0 %v69_v22 }
 0x1ad   :  { %v175_v26 = vpop.f32.mrb[0].mxu0 }
 0x1ae   :  { %v176_v27 = vadd.f32 %v311_v25, %v175_v26  ;;  %v365_v28 = vpop.f32.mrb[1].mxu0 }
 0x1af   :  { %v178_v29 = vpop.f32.mrb[2].mxu0 }
 0x1b0   :  { %v181_v30 = vmax.f32 %v176_v27, 0.0  ;;  %v366_v31 = vpop.f32.mrb[3].mxu0 }
 0x1b2   :  { %v182_v32 = vpack.c.bf16 %v181_v30, %v181_v30 }
 0x1b4   :  { %384 = vmatmul.mubr.bf16.vlgmr.msra.gmra.mrb[0].mxu1 %v182_v32 }
 0x287   :  { %v288_v34 = vpop.f32.mrb[0].mxu1 }
 0x288   :  { %v289_v35 = vadd.f32 %v320_v33, %v288_v34  ;;  %v385_v36 = vpop.f32.mrb[1].mxu1 }
 0x289   :  { %v291_v37 = vpop.f32.mrb[2].mxu1 }
 0x28a   :  { %294 = vst [vmem:[#allocation8] sm:$0xff] %v289_v35  ;;  %v386_v38 = vpop.f32.mrb[3].mxu1 }
 0x28b   :  { %490 = shalt.err (!%p487_p0)
}
 0x28c   :  { %s491_s4 = scalar_lea.hbm %s610_s5, 128 }
 0x28d   :  { %p492_p1 = scmp.ne.s32.totalorder %s610_s5, %s491_s4  ;;  %p495_p2 = scmp.lt.u32.totalorder %s491_s4, %s610_s5 }
 0x28f   :  { %p497_p3 = pnand %p495_p2, %p492_p1 }
 0x291   :  { %500 = shalt.err (!%p497_p3)
}
 0x292   :  { %304 = dma.vmem_to_hbm [thread:$0]  %s302_s8, 128, %s610_s5, [#allocation4]  }
 0x293   :  { %505 = dma.done.wait [#allocation4], 128  }
 0x294   :  { %506 = vsyncadd [#allocation4], 4294967168 }
 0x295   :  { %308 = vsyncpa [#allocation3], 1 }
 0x296   :  { %309 = vsyncpa [#allocation6], 1 }
 0x297   :  { %310 = vsyncpa [#allocation4], 1 }

</bundles_post_ra>
